<compile_context>
chip_gen: v5e
topology: v5e:2x2
jax: 0.10.0
libtpu: 0.0.40
codegen_flags: <defaults>
</compile_context>

<pallas_src>
import functools
import math

import jax
import jax.numpy as jnp
from jax.experimental import pallas as pl
from jax.experimental.pallas import tpu as pltpu


# ----------------------------------------------------------------------------- tunables
_LANE = 128
_SUBLANE = 8
_SMALL_INPUT_ELEMS = 1 << 20          # below this, XLA's fused reduce wins on fixed cost
_PALLAS_DTYPES = (jnp.dtype(jnp.float32), jnp.dtype(jnp.bfloat16),
                  jnp.dtype(jnp.float16))


@functools.lru_cache(maxsize=None)
def _select_tunables():
    """Generation-aware (block_bytes, vmem_limit_bytes)."""
    vmem_cap = None
    try:
        info = pltpu.get_tpu_info()
        vmem_cap = getattr(info, "vmem_capacity_bytes", None)
    except Exception:
        vmem_cap = None
    if vmem_cap is not None and vmem_cap >= 96 * 1024 * 1024:
        # v5e / v6e: 128 MiB physical VMEM -> higher scoped limit.
        return 16 * 1024 * 1024, 64 * 1024 * 1024
    # v7x (64 MiB physical) or unknown: 2 x 16 MiB double-buffered + accs <= 48 MiB.
    return 16 * 1024 * 1024, 48 * 1024 * 1024


def _native_sublane(dtype):
    """Native sublanes per vreg tile: f32 -> 8, bf16/f16 -> 16."""
    return _SUBLANE * (4 // jnp.dtype(dtype).itemsize)


def _fold_chunks(arr, op, acc_w):
    """Fold (..., k*acc_w) -> (..., acc_w) by log-depth, 128-aligned halving.

    All slices land on acc_w (=lane tile) boundaries, so every step is a pure
    elementwise VPU op with no relayout; depth is O(log2(k)).
    """
    w = arr.shape[-1]
    carry = None
    while w > acc_w:
        nc = w // acc_w
        if nc % 2 == 1:
            last = arr[..., (nc - 1) * acc_w:]
            carry = last if carry is None else op(carry, last)
            w = (nc - 1) * acc_w
            arr = arr[..., :w]
        else:
            half = w // 2
            arr = op(arr[..., :half], arr[..., half:])
            w = half
    return arr if carry is None else op(arr, carry)


# ----------------------------------------------------------------------------- per-tensor
def _minmax_tensor_kernel(x_ref, mn_ref, mx_ref, *, sub):
    """Accumulate row-slab min/max into a lane-dense (sub, 128) partial per split."""
    @pl.when(pl.program_id(1) == 0)          # first step within this split
    def _init():
        mn_ref[...] = jnp.full(mn_ref.shape, jnp.inf, mn_ref.dtype)
        mx_ref[...] = jnp.full(mx_ref.shape, -jnp.inf, mx_ref.dtype)

    blk = x_ref[...]                          # (tile_r, 128)
    m = blk.shape[0] // sub
    # Splitting the major axis by the dtype-native sublane count keeps vreg
    # tiles intact: the axis-0 reduce and the accumulate are pure VPU ops.
    b = blk.reshape(m, sub, blk.shape[1])
    mn_ref[...] = jnp.minimum(mn_ref[...], jnp.min(b, axis=0))
    mx_ref[...] = jnp.maximum(mx_ref[...], jnp.max(b, axis=0))


def _minmax_per_tensor_pallas(x, block_bytes, vmem_limit):
    """Caller guarantees x.size % 128 == 0 and (x.size // 128) >= native sublane."""
    lane = _LANE
    itemsize = jnp.dtype(x.dtype).itemsize
    sub = _native_sublane(x.dtype)

    rows = x.size // lane
    x2d = x.reshape(rows, lane)               # free row-major regrouping (no copy)

    max_tile_r = max(sub, (block_bytes // (lane * itemsize)) // sub * sub)
    tile_r = min((rows // sub) * sub, max_tile_r)
    r_full = rows // tile_r                   # full blocks streamed by the kernel
    rows_main = r_full * tile_r

    # Unconditional 2-way "parallel" split (both v7x TensorCores stream HBM).
    # Phantom steps (odd r_full) re-read the last block via a clamped index --
    # min/max is idempotent, so no masking is needed in the hot loop.
    n_split = 2 if r_full >= 2 else 1
    t_steps = pl.cdiv(r_full, n_split)

    def in_map(p, t):
        return (jnp.minimum(p * t_steps + t, r_full - 1), 0)

    kernel = functools.partial(_minmax_tensor_kernel, sub=sub)

    mn, mx = pl.pallas_call(
        kernel,
        out_shape=(jax.ShapeDtypeStruct((n_split * sub, lane), x.dtype),
                   jax.ShapeDtypeStruct((n_split * sub, lane), x.dtype)),
        grid=(n_split, t_steps),
        in_specs=[pl.BlockSpec((tile_r, lane), in_map)],
        out_specs=(pl.BlockSpec((sub, lane), lambda p, t: (p, 0)),
                   pl.BlockSpec((sub, lane), lambda p, t: (p, 0))),
        compiler_params=pltpu.CompilerParams(
            dimension_semantics=("parallel", "arbitrary"),
            vmem_limit_bytes=vmem_limit),
    )(x2d)

    # Tiny XLA epilogue: reduce the partials and fold the ragged row tail.
    xmin = jnp.min(mn)
    xmax = jnp.max(mx)
    if rows_main < rows:
        tail = x2d[rows_main:]
        xmin = jnp.minimum(xmin, jnp.min(tail))
        xmax = jnp.maximum(xmax, jnp.max(tail))
    return xmin, xmax


# ----------------------------------------------------------------------------- per-channel
def _minmax_channel_kernel(x_ref, mn_ref, mx_ref, *,
                           hw_total, tile_hw, acc_w, hw_steps, hw_blocks, mask_hw):
    """Accumulate per-channel min/max into a resident (1, C, acc_w) output per split."""
    s = pl.program_id(0)
    ni = pl.program_id(1)
    ti = pl.program_id(2)

    @pl.when((ni == 0) & (ti == 0))           # first step within this split
    def _init():
        mn_ref[...] = jnp.full(mn_ref.shape, jnp.inf, mn_ref.dtype)
        mx_ref[...] = jnp.full(mx_ref.shape, -jnp.inf, mx_ref.dtype)

    blk = x_ref[...]                           # (tile_n, C, tile_hw)

    def _accumulate(src_min, src_max):
        red_min = jnp.min(src_min, axis=0, keepdims=True)   # (1, C, tile_hw), VPU only
        red_max = jnp.max(src_max, axis=0, keepdims=True)
        mn_ref[...] = jnp.minimum(mn_ref[...], _fold_chunks(red_min, jnp.minimum, acc_w))
        mx_ref[...] = jnp.maximum(mx_ref[...], _fold_chunks(red_max, jnp.maximum, acc_w))

    if mask_hw:
        # Effective hw-block index (phantom steps are clamped to the last block;
        # re-reducing it -- masked or not -- is idempotent).
        hb = jnp.minimum(s * hw_steps + ti, hw_blocks - 1)
        is_edge = (hb + 1) * tile_hw > hw_total

        @pl.when(is_edge)
        def _masked():
            # Rank-reduced lane mask: (1, 1, tile_hw) iota, no full-block temporaries.
            hw_idx = hb * tile_hw + jax.lax.broadcasted_iota(
                jnp.int32, (1, 1, tile_hw), 2)
            valid = hw_idx < hw_total
            _accumulate(jnp.where(valid, blk, jnp.array(jnp.inf, blk.dtype)),
                        jnp.where(valid, blk, jnp.array(-jnp.inf, blk.dtype)))

        @pl.when(jnp.logical_not(is_edge))
        def _full():
            _accumulate(blk, blk)
    else:
        _accumulate(blk, blk)


def _minmax_per_channel_pallas(x, block_bytes, vmem_limit):
    lane = _LANE
    n, c = x.shape[0], x.shape[1]
    hw = math.prod(x.shape[2:])
    x3 = x.reshape(n, c, hw)                   # free contiguous regroup, no transpose
    itemsize = jnp.dtype(x.dtype).itemsize

    # Reserve room for the resident (1, C, 128) accumulators (min & max, x2 buffers).
    # TODO(synk): for very large C, also tile the channel axis into the grid.
    acc_bytes = 4 * c * lane * itemsize
    budget = max(min(1 << 20, block_bytes), block_bytes - acc_bytes)

    if hw < lane:
        tile_hw, acc_w = hw, hw
    else:
        max_lanes = max(lane, (budget // (c * itemsize)) // lane * lane)
        tile_hw = min((hw // lane) * lane, max_lanes)
        acc_w = lane
    tile_n = int(max(1, min(n, budget // (c * tile_hw * itemsize))))

    n_full = n // tile_n                       # full N blocks streamed by the kernel
    n_main = n_full * tile_n
    hw_blocks = pl.cdiv(hw, tile_hw)
    mask_hw = (hw % tile_hw) != 0

    # Leading "parallel" split over hw-blocks so both v7x TensorCores stream.
    # TODO(synk): also split the N-block axis when hw_blocks == 1 but n_full >= 2.
    n_split = 2 if hw_blocks >= 2 else 1
    hw_steps = pl.cdiv(hw_blocks, n_split)

    def in_map(s, ni, ti):
        return (ni, 0, jnp.minimum(s * hw_steps + ti, hw_blocks - 1))

    kernel = functools.partial(
        _minmax_channel_kernel, hw_total=hw, tile_hw=tile_hw, acc_w=acc_w,
        hw_steps=hw_steps, hw_blocks=hw_blocks, mask_hw=mask_hw)

    mn, mx = pl.pallas_call(
        kernel,
        out_shape=(jax.ShapeDtypeStruct((n_split, c, acc_w), x.dtype),
                   jax.ShapeDtypeStruct((n_split, c, acc_w), x.dtype)),
        grid=(n_split, n_full, hw_steps),
        in_specs=[pl.BlockSpec((tile_n, c, tile_hw), in_map)],
        out_specs=(pl.BlockSpec((1, c, acc_w), lambda s, ni, ti: (s, 0, 0)),
                   pl.BlockSpec((1, c, acc_w), lambda s, ni, ti: (s, 0, 0))),
        compiler_params=pltpu.CompilerParams(
            dimension_semantics=("parallel", "arbitrary", "arbitrary"),
            vmem_limit_bytes=vmem_limit),
    )(x3)

    # Tiny XLA epilogue: combine per-split partials and fold the ragged batch tail.
    ch_min = jnp.min(mn, axis=(0, 2))
    ch_max = jnp.max(mx, axis=(0, 2))
    if n_main < n:
        tail = x3[n_main:]
        ch_min = jnp.minimum(ch_min, jnp.min(tail, axis=(0, 2)))
        ch_max = jnp.maximum(ch_max, jnp.max(tail, axis=(0, 2)))
    return ch_min, ch_max


# ----------------------------------------------------------------------------- dispatcher
@functools.partial(jax.jit, static_argnames=("per_channel", "force_pallas"))
def _minmax_range(x, per_channel=False, force_pallas=False):
    x = jnp.asarray(x)

    # f64 / integer inputs use XLA's fused reduce (no narrower-accumulator loss).
    use_pallas = (jnp.dtype(x.dtype) in _PALLAS_DTYPES
                  and (force_pallas or x.size >= _SMALL_INPUT_ELEMS))

    if per_channel:
        n, c = x.shape[0], x.shape[1]
        hw = math.prod(x.shape[2:])
        if use_pallas and n >= 1 and hw >= 1:
            block_bytes, vmem_limit = _select_tunables()
            return _minmax_per_channel_pallas(x, block_bytes, vmem_limit)
        x3 = x.reshape(n, c, hw)
        return jnp.min(x3, axis=(0, 2)), jnp.max(x3, axis=(0, 2))

    # per-tensor
    k = x.size
    if use_pallas and (k % _LANE == 0):
        sub = _native_sublane(x.dtype)
        if (k // _LANE) >= sub:
            block_bytes, vmem_limit = _select_tunables()
            return _minmax_per_tensor_pallas(x, block_bytes, vmem_limit)
    # TODO(synk): element counts not divisible by 128 (or tiny / integer / f64
    # inputs) use XLA's fused single-pass reduce instead of padding in HBM.
    return jnp.min(x), jnp.max(x)


# ----------------------------------------------------------------------------- module port
class RangeEstimatorBase:
    """JAX/Pallas port of RangeEstimatorBase (no parameters; two buffers)."""

    def __init__(self, per_channel=False, quantizer=None, force_pallas=False):
        self.current_xmin = None
        self.current_xmax = None
        self.per_channel = per_channel
        self.quantizer = quantizer
        self.force_pallas = force_pallas

    def forward(self, x):
        # TODO(synk): the PyTorch base class forward() raises NotImplementedError;
        # we implement the canonical current-min/max estimator semantics here.
        xmin, xmax = _minmax_range(x, per_channel=self.per_channel,
                                   force_pallas=self.force_pallas)
        self.current_xmin = xmin
        self.current_xmax = xmax
        return self.current_xmin, self.current_xmax

    __call__ = forward

    def reset(self):
        self.current_xmin = None
        self.current_xmax = None

    def extra_repr(self):
        return f"per_channel={self.per_channel}"

    def __repr__(self):
        return f"{type(self).__name__}({self.extra_repr()})"


if __name__ == "__main__":
    key = jax.random.PRNGKey(0)
    x = jax.random.normal(key, (2, 4, 16, 16), dtype=jnp.float32)   # NCHW

    # per-tensor (force the Pallas path so the kernel is exercised at demo size)
    est = RangeEstimatorBase(per_channel=False, force_pallas=True)
    xmin, xmax = est(x)
    jax.block_until_ready((xmin, xmax))
    assert jnp.allclose(xmin, jnp.min(x)), (xmin, jnp.min(x))
    assert jnp.allclose(xmax, jnp.max(x)), (xmax, jnp.max(x))

    # per-channel (channel axis = dim 1 of NCHW)
    est_pc = RangeEstimatorBase(per_channel=True, force_pallas=True)
    xmin_c, xmax_c = est_pc(x)
    jax.block_until_ready((xmin_c, xmax_c))
    ref_min = jnp.min(x, axis=(0, 2, 3))
    ref_max = jnp.max(x, axis=(0, 2, 3))
    assert xmin_c.shape == (4,) and xmax_c.shape == (4,)
    assert jnp.allclose(xmin_c, ref_min), (xmin_c, ref_min)
    assert jnp.allclose(xmax_c, ref_max), (xmax_c, ref_max)

    # bf16 input exercises the dtype-aware (16, 128) sublane tiling / bf16 accumulator
    xb = x.astype(jnp.bfloat16)
    bmin, bmax = RangeEstimatorBase(force_pallas=True)(xb)
    jax.block_until_ready((bmin, bmax))
    assert jnp.allclose(bmin, jnp.min(xb)) and jnp.allclose(bmax, jnp.max(xb))

    # Internal paths with tiny block budgets: exercises the 2-way parallel split,
    # the clamped phantom block, the ragged row tail and the masked hw edge.
    vmem_test = 32 * 1024 * 1024
    x_odd = jax.random.normal(jax.random.PRNGKey(1), (75, 128), dtype=jnp.float32)
    tmin, tmax = _minmax_per_tensor_pallas(x_odd, block_bytes=4096,
                                           vmem_limit=vmem_test)
    jax.block_until_ready((tmin, tmax))
    assert jnp.allclose(tmin, jnp.min(x_odd)) and jnp.allclose(tmax, jnp.max(x_odd))

    x_pc = jax.random.normal(jax.random.PRNGKey(2), (3, 4, 16, 75), dtype=jnp.float32)
    cmin, cmax = _minmax_per_channel_pallas(x_pc, block_bytes=4096,
                                            vmem_limit=vmem_test)
    jax.block_until_ready((cmin, cmax))
    assert jnp.allclose(cmin, jnp.min(x_pc, axis=(0, 2, 3)))
    assert jnp.allclose(cmax, jnp.max(x_pc, axis=(0, 2, 3)))

    # hw < 128 path + ragged batch tail folded in the wrapper
    x_pc2 = jax.random.normal(jax.random.PRNGKey(3), (3, 4, 8, 12), dtype=jnp.float32)
    c2min, c2max = _minmax_per_channel_pallas(x_pc2, block_bytes=3072,
                                              vmem_limit=vmem_test)
    jax.block_until_ready((c2min, c2max))
    assert jnp.allclose(c2min, jnp.min(x_pc2, axis=(0, 2, 3)))
    assert jnp.allclose(c2max, jnp.max(x_pc2, axis=(0, 2, 3)))

    # default path: small inputs short-circuit to XLA's fused reduce
    est_small = RangeEstimatorBase(per_channel=False)
    smin, smax = est_small(x)
    jax.block_until_ready((smin, smax))
    assert jnp.allclose(smin, jnp.min(x)) and jnp.allclose(smax, jnp.max(x))

    print("KERNEL_OK")
</pallas_src>

<mosaic_0001>
module attributes {stable_mosaic.version = 11 : i64} {
  func.func @_minmax_tensor_kernel(%arg0: i32, %arg1: i32, %arg2: memref<16x128xf32, #tpu.memory_space<vmem>>, %arg3: memref<8x128xf32, #tpu.memory_space<vmem>>, %arg4: memref<8x128xf32, #tpu.memory_space<vmem>>) attributes {dimension_semantics = [#tpu.dimension_semantics<parallel>, #tpu.dimension_semantics<arbitrary>], iteration_bounds = array<i64: 1, 1>, scalar_prefetch = 0 : i64, scratch_operands = 0 : i64, tpu.core_type = #tpu.core_type<tc>, window_params = [{transform_indices = @transform_0, window_bounds = array<i64: 16, 128>}, {transform_indices = @transform_1, window_bounds = array<i64: 8, 128>}, {transform_indices = @transform_2, window_bounds = array<i64: 8, 128>}]} {
    %c0_i32 = arith.constant 0 : i32
    %0 = arith.cmpi eq, %arg1, %c0_i32 : i32
    %1 = arith.extui %0 : i1 to i32
    %c0_i32_0 = arith.constant 0 : i32
    %2 = arith.cmpi ne, %1, %c0_i32_0 : i32
    scf.if %2 {
      %cst_11 = arith.constant 0x7F800000 : f32
      %13 = vector.broadcast %cst_11 : f32 to vector<8x128xf32>
      %c0_12 = arith.constant 0 : index
      %c0_13 = arith.constant 0 : index
      %14 = vector.load %arg3[%c0_12, %c0_13] : memref<8x128xf32, #tpu.memory_space<vmem>>, vector<8x128xf32>
      tpu.vector_store %arg3[%c0_12, %c0_13], %13 {strides = array<i32>} : memref<8x128xf32, #tpu.memory_space<vmem>>, vector<8x128xf32>,
      %cst_14 = arith.constant 0xFF800000 : f32
      %15 = vector.broadcast %cst_14 : f32 to vector<8x128xf32>
      %c0_15 = arith.constant 0 : index
      %c0_16 = arith.constant 0 : index
      %16 = vector.load %arg4[%c0_15, %c0_16] : memref<8x128xf32, #tpu.memory_space<vmem>>, vector<8x128xf32>
      tpu.vector_store %arg4[%c0_15, %c0_16], %15 {strides = array<i32>} : memref<8x128xf32, #tpu.memory_space<vmem>>, vector<8x128xf32>,
    } else {
    }
    %c0 = arith.constant 0 : index
    %c0_1 = arith.constant 0 : index
    %3 = vector.load %arg2[%c0, %c0_1] : memref<16x128xf32, #tpu.memory_space<vmem>>, vector<16x128xf32>
    %4 = vector.shape_cast %3 : vector<16x128xf32> to vector<2x8x128xf32>
    %c0_2 = arith.constant 0 : index
    %c0_3 = arith.constant 0 : index
    %5 = vector.load %arg3[%c0_2, %c0_3] : memref<8x128xf32, #tpu.memory_space<vmem>>, vector<8x128xf32>
    %cst = arith.constant dense<0x7F800000> : vector<8x128xf32>
    %6 = vector.multi_reduction <minimumf>, %4, %cst [0] : vector<2x8x128xf32> to vector<8x128xf32>
    %7 = arith.minimumf %5, %6 : vector<8x128xf32>
    %c0_4 = arith.constant 0 : index
    %c0_5 = arith.constant 0 : index
    %8 = vector.load %arg3[%c0_4, %c0_5] : memref<8x128xf32, #tpu.memory_space<vmem>>, vector<8x128xf32>
    tpu.vector_store %arg3[%c0_4, %c0_5], %7 {strides = array<i32>} : memref<8x128xf32, #tpu.memory_space<vmem>>, vector<8x128xf32>,
    %c0_6 = arith.constant 0 : index
    %c0_7 = arith.constant 0 : index
    %9 = vector.load %arg4[%c0_6, %c0_7] : memref<8x128xf32, #tpu.memory_space<vmem>>, vector<8x128xf32>
    %cst_8 = arith.constant dense<0xFF800000> : vector<8x128xf32>
    %10 = vector.multi_reduction <maximumf>, %4, %cst_8 [0] : vector<2x8x128xf32> to vector<8x128xf32>
    %11 = arith.maximumf %9, %10 : vector<8x128xf32>
    %c0_9 = arith.constant 0 : index
    %c0_10 = arith.constant 0 : index
    %12 = vector.load %arg4[%c0_9, %c0_10] : memref<8x128xf32, #tpu.memory_space<vmem>>, vector<8x128xf32>
    tpu.vector_store %arg4[%c0_9, %c0_10], %11 {strides = array<i32>} : memref<8x128xf32, #tpu.memory_space<vmem>>, vector<8x128xf32>,
    return
  }
  func.func @transform_0(%arg0: i32, %arg1: i32) -> (i32, i32) {
    %c1_i32 = arith.constant 1 : i32
    %0 = arith.muli %arg0, %c1_i32 : i32
    %1 = arith.addi %0, %arg1 : i32
    %c0_i32 = arith.constant 0 : i32
    %2 = arith.minsi %1, %c0_i32 : i32
    %c0_i32_0 = arith.constant 0 : i32
    %c0_i32_1 = arith.constant 0 : i32
    return %2, %c0_i32_0 : i32, i32
  }
  func.func @transform_1(%arg0: i32, %arg1: i32) -> (i32, i32) {
    %c0_i32 = arith.constant 0 : i32
    %c0_i32_0 = arith.constant 0 : i32
    return %arg0, %c0_i32 : i32, i32
  }
  func.func @transform_2(%arg0: i32, %arg1: i32) -> (i32, i32) {
    %c0_i32 = arith.constant 0 : i32
    %c0_i32_0 = arith.constant 0 : i32
    return %arg0, %c0_i32 : i32, i32
  }
}

</mosaic_0001>

<bundles_post_ra>
// kernel: _minmax_range.1
= control target key start
LH: loop header
LB: loop body
LE: loop exit
PB: predicated region body
PF: predicated region fallthrough
CT: control target
= control target key end

     0   :  { %s101_s0 = inlined_call_operand.vmem [shape: f32[16,128], index: 0, kind: input, shape index: {}]   ;;  %s102_s1 = inlined_call_operand.vmem [shape: f32[8,128], index: 1, kind: output, shape index: {0}]   ;;  %s103_s2 = inlined_call_operand.vmem [shape: f32[8,128], index: 2, kind: output, shape index: {1}]  }
   0x1   :  { %v48_v0 = vld [vmem:[%s101_s0] sm:$0xff]  ;;  %v49_v1 = vld [vmem:[%s101_s0 + $0x8] sm:$0xff] }
   0x2   :  { %v51_v2 = vmin.f32 %v48_v0, %v49_v1  ;;  %v55_v3 = vmax.f32 %v48_v0, %v49_v1 }
   0x4   :  { %53 = vst [vmem:[%s102_s1] sm:$0xff] %v51_v2 }
   0x5   :  { %57 = vst [vmem:[%s103_s2] sm:$0xff] %v55_v3 }

</bundles_post_ra>
